<compile_context>
chip_gen: v6e
topology: v6e:2x2x1
jax: 0.10.0
libtpu: 0.0.40
codegen_flags: <defaults>
</compile_context>

<pallas_src>
import functools

import jax
import jax.numpy as jnp
from jax.experimental import pallas as pl
from jax.experimental.pallas import tpu as pltpu

hidden_size = 128
input_size = 64 * 5     # 320
output_size = 57
padded_output = 128     # lane-dense output width (>= output_size)

_SMALL_BATCH = 64       # below this, XLA's fused dot beats kernel launch cost


def _round_up(n, m):
    return ((n + m - 1) // m) * m


def _detect_device_kind():
    try:
        return jax.devices()[0].device_kind.lower()
    except Exception:  # pragma: no cover - backend probing best-effort only
        return ""


_KIND = _detect_device_kind()
_HAS_BF16_VPU = any(g in _KIND for g in ("v6", "v7"))   # v6e / v7x bf16 VALU
_IS_V7X = "v7" in _KIND
_BLOCK_M_CAP = 4096 if _HAS_BF16_VPU else 2048          # v5e: 16 MiB scoped VMEM


def coarse_pose_kernel(x_ref, w1_ref, b1_ref, w2_ref, b2_ref, o_ref, *,
                       bf16_hidden):
    xb = x_ref[...].astype(jnp.bfloat16)                 # no-op if x is bf16
    if bf16_hidden:
        # v6e/v7x: MXU pops bf16 directly (f32 internal accumulation);
        # bias + ReLU on the bf16 VALU -> no separate f32->bf16 repack of h.
        h = jnp.dot(xb, w1_ref[...], preferred_element_type=jnp.bfloat16)
        h = jnp.maximum(h + b1_ref[...].astype(jnp.bfloat16), 0.0)
    else:
        # v5e: no bf16 VPU -> keep the epilogue in f32, one pack before fc2.
        h = jnp.dot(xb, w1_ref[...], preferred_element_type=jnp.float32)
        h = jnp.maximum(h + b1_ref[...], 0.0).astype(jnp.bfloat16)
    # fc2 into a lane-dense, zero-padded 128-wide output tile (cols >= 57 are 0).
    y = jnp.dot(h, w2_ref[...], preferred_element_type=jnp.float32)
    o_ref[...] = (y + b2_ref[...]).astype(o_ref.dtype)


def prepare_params(w1, b1, w2, b2):
    """One-time repack of PyTorch-layout params (y = x @ W.T + b).

    Returns:
      w1_t:   (input_size, hidden_size)    bf16
      b1_2d:  (1, hidden_size)             f32
      w2_pad: (hidden_size, padded_output) bf16, cols >= output_size are zero
      b2_pad: (1, padded_output)           f32, entries >= output_size are zero
    """
    w1_t = jnp.asarray(w1, jnp.float32).T.astype(jnp.bfloat16)
    b1_2d = jnp.asarray(b1, jnp.float32).reshape(1, hidden_size)
    w2_pad = jnp.zeros((hidden_size, padded_output), jnp.bfloat16)
    w2_pad = w2_pad.at[:, :output_size].set(
        jnp.asarray(w2, jnp.float32).T.astype(jnp.bfloat16))
    b2_pad = jnp.zeros((1, padded_output), jnp.float32)
    b2_pad = b2_pad.at[0, :output_size].set(jnp.asarray(b2, jnp.float32))
    return w1_t, b1_2d, w2_pad, b2_pad


def _pick_block_m(B):
    if B < 8:
        return B                              # full-dim block (allowed)
    block_m = min(_BLOCK_M_CAP, (B // 8) * 8)  # multiple of 8, never > B
    # v7x has 2 TensorCores: make sure a large batch gives >= 2 parallel steps.
    if _IS_V7X and B >= 1024 and pl.cdiv(B, block_m) < 2:
        block_m = _round_up(pl.cdiv(B, 2), 8)
    return block_m


def _pallas_padded(x, w1_t, b1_2d, w2_pad, b2_pad):
    """Fused fc1->ReLU->fc2; returns lane-dense (B, 128) f32, cols>=57 zero."""
    B = x.shape[0]
    block_m = _pick_block_m(B)
    grid = (pl.cdiv(B, block_m),)
    rows = grid[0] * block_m

    flops = 2 * rows * (input_size * hidden_size + hidden_size * padded_output)
    bytes_accessed = (rows * input_size * x.dtype.itemsize
                      + (input_size * hidden_size
                         + hidden_size * padded_output) * 2
                      + (hidden_size + padded_output) * 4
                      + rows * padded_output * 4)

    return pl.pallas_call(
        functools.partial(coarse_pose_kernel, bf16_hidden=_HAS_BF16_VPU),
        out_shape=jax.ShapeDtypeStruct((B, padded_output), jnp.float32),
        grid=grid,
        in_specs=[
            pl.BlockSpec((block_m, input_size), lambda i: (i, 0)),        # x tile
            pl.BlockSpec((input_size, hidden_size), lambda i: (0, 0)),    # w1 (VMEM-resident)
            pl.BlockSpec((1, hidden_size), lambda i: (0, 0)),             # b1
            pl.BlockSpec((hidden_size, padded_output), lambda i: (0, 0)), # w2 (VMEM-resident)
            pl.BlockSpec((1, padded_output), lambda i: (0, 0)),           # b2
        ],
        out_specs=pl.BlockSpec((block_m, padded_output), lambda i: (i, 0)),
        compiler_params=pltpu.CompilerParams(
            dimension_semantics=("parallel",)),
        cost_estimate=pl.CostEstimate(
            flops=flops, transcendentals=0, bytes_accessed=bytes_accessed),
    )(x, w1_t, b1_2d, w2_pad, b2_pad)


# Consumers that can fuse / tolerate padding should use this (no slice copy).
coarse_pose_net_pallas_padded = jax.jit(_pallas_padded)


@jax.jit
def coarse_pose_net_pallas(x, w1_t, b1_2d, w2_pad, b2_pad):
    """x: (B, input_size) f32 or bf16; returns (B, 57) f32 (module semantics)."""
    out = _pallas_padded(x, w1_t, b1_2d, w2_pad, b2_pad)
    return out[:, :output_size]


@jax.jit
def _xla_forward(x, w1_t, b1_2d, w2_pad, b2_pad):
    """Plain-XLA fallback for tiny batches (kernel launch overhead dominates)."""
    h = jnp.dot(x.astype(jnp.bfloat16), w1_t,
                preferred_element_type=jnp.float32) + b1_2d
    h = jnp.maximum(h, 0.0).astype(jnp.bfloat16)
    y = jnp.dot(h, w2_pad[:, :output_size],
                preferred_element_type=jnp.float32)
    return y + b2_pad[:, :output_size]


def coarse_pose_net(x, w1_t, b1_2d, w2_pad, b2_pad):
    """Dispatcher: tiny batches -> fused XLA dot, otherwise the Pallas kernel."""
    if x.shape[0] <= _SMALL_BATCH:
        return _xla_forward(x, w1_t, b1_2d, w2_pad, b2_pad)
    return coarse_pose_net_pallas(x, w1_t, b1_2d, w2_pad, b2_pad)


def init_params(key):
    # Deterministic synthetic init mimicking nn.Linear shapes (PyTorch layout):
    # fc1.weight: (hidden, input), fc1.bias: (hidden,)
    # fc2.weight: (out, hidden),   fc2.bias: (out,)
    k1, k2, k3, k4 = jax.random.split(key, 4)
    lim1 = 1.0 / jnp.sqrt(input_size)
    lim2 = 1.0 / jnp.sqrt(hidden_size)
    w1 = jax.random.uniform(k1, (hidden_size, input_size), jnp.float32, -lim1, lim1)
    b1 = jax.random.uniform(k2, (hidden_size,), jnp.float32, -lim1, lim1)
    w2 = jax.random.uniform(k3, (output_size, hidden_size), jnp.float32, -lim2, lim2)
    b2 = jax.random.uniform(k4, (output_size,), jnp.float32, -lim2, lim2)
    return w1, b1, w2, b2


def _reference_like_kernel(x, w1, b1, w2, b2):
    """Pure-JAX reference matching the kernel's dtype path on this chip."""
    xb = x.astype(jnp.bfloat16)
    w1b = jnp.asarray(w1, jnp.float32).T.astype(jnp.bfloat16)
    w2b = jnp.asarray(w2, jnp.float32).T.astype(jnp.bfloat16)
    if _HAS_BF16_VPU:
        h = jnp.dot(xb, w1b, preferred_element_type=jnp.bfloat16)
        h = jnp.maximum(h + b1.astype(jnp.bfloat16), 0.0)
    else:
        h = jnp.dot(xb, w1b, preferred_element_type=jnp.float32)
        h = jnp.maximum(h + b1, 0.0).astype(jnp.bfloat16)
    return jnp.dot(h, w2b, preferred_element_type=jnp.float32) + b2


if __name__ == "__main__":
    key = jax.random.PRNGKey(0)
    kx, kp = jax.random.split(key)
    w1, b1, w2, b2 = init_params(kp)
    params = prepare_params(w1, b1, w2, b2)   # one-time repack, out of hot path

    # B=8: single exact tile; B=13: ragged last block (masked writes);
    # B=200: larger single tile.  All small.
    for B in (8, 13, 200):
        x = jax.random.normal(jax.random.fold_in(kx, B), (B, input_size),
                              jnp.float32)

        out = coarse_pose_net_pallas(x, *params)      # always exercise the kernel
        jax.block_until_ready(out)
        assert out.shape == (B, output_size)

        # Padded lane-dense output: valid cols match, padded cols are zero.
        out_pad = coarse_pose_net_pallas_padded(x, *params)
        jax.block_until_ready(out_pad)
        assert out_pad.shape == (B, padded_output)
        assert jnp.allclose(out_pad[:, :output_size], out)
        assert jnp.allclose(out_pad[:, output_size:], 0.0)

        # Reference matching the kernel's numerics (bf16 operands, f32 acc).
        ref_k = _reference_like_kernel(x, w1, b1, w2, b2)
        assert jnp.allclose(out, ref_k, atol=2e-2, rtol=2e-2), (
            f"B={B}: kernel deviates from bf16 reference")

        # Loose sanity check against the full-f32 PyTorch-equivalent forward.
        ref_f32 = jnp.maximum(x @ w1.T + b1, 0.0) @ w2.T + b2
        assert jnp.allclose(out, ref_f32, atol=1e-1, rtol=1e-1), (
            f"B={B}: kernel deviates from f32 reference")

        # Dispatcher agrees (tiny B -> XLA fallback, larger B -> Pallas path).
        out_d = coarse_pose_net(x, *params)
        jax.block_until_ready(out_d)
        assert out_d.shape == (B, output_size)
        assert jnp.allclose(out_d, ref_f32, atol=1e-1, rtol=1e-1)

    print("KERNEL_OK")
</pallas_src>

<mosaic_0001>
module attributes {stable_mosaic.version = 11 : i64} {
  func.func @coarse_pose_kernel(%arg0: i32, %arg1: memref<8x320xf32, #tpu.memory_space<vmem>>, %arg2: memref<320x128xbf16, #tpu.memory_space<vmem>>, %arg3: memref<1x128xf32, #tpu.memory_space<vmem>>, %arg4: memref<128x128xbf16, #tpu.memory_space<vmem>>, %arg5: memref<1x128xf32, #tpu.memory_space<vmem>>, %arg6: memref<8x128xf32, #tpu.memory_space<vmem>>) attributes {dimension_semantics = [#tpu.dimension_semantics<parallel>], iteration_bounds = array<i64: 1>, scalar_prefetch = 0 : i64, scratch_operands = 0 : i64, tpu.core_type = #tpu.core_type<tc>, window_params = [{transform_indices = @transform_0, window_bounds = array<i64: 8, 320>}, {pipeline_mode = #tpu.pipeline_mode<synchronous>, transform_indices = @transform_1, window_bounds = array<i64: 320, 128>}, {pipeline_mode = #tpu.pipeline_mode<synchronous>, transform_indices = @transform_2, window_bounds = array<i64: 1, 128>}, {pipeline_mode = #tpu.pipeline_mode<synchronous>, transform_indices = @transform_3, window_bounds = array<i64: 128, 128>}, {pipeline_mode = #tpu.pipeline_mode<synchronous>, transform_indices = @transform_4, window_bounds = array<i64: 1, 128>}, {transform_indices = @transform_5, window_bounds = array<i64: 8, 128>}]} {
    %c0 = arith.constant 0 : index
    %c0_0 = arith.constant 0 : index
    %0 = vector.load %arg1[%c0, %c0_0] : memref<8x320xf32, #tpu.memory_space<vmem>>, vector<8x320xf32>
    %1 = arith.truncf %0 : vector<8x320xf32> to vector<8x320xbf16>
    %c0_1 = arith.constant 0 : index
    %c0_2 = arith.constant 0 : index
    %2 = vector.load %arg2[%c0_1, %c0_2] : memref<320x128xbf16, #tpu.memory_space<vmem>>, vector<320x128xbf16>
    %cst = arith.constant dense<0.000000e+00> : vector<8x128xf32>
    %3 = tpu.matmul %1, %2, %cst {dimension_numbers = #tpu.dot_dimension_numbers<[1], [0], [0], [1], [0, 0, 1, 1], [], []>} : vector<8x320xbf16>, vector<320x128xbf16>, vector<8x128xf32> -> vector<8x128xf32>
    %c0_3 = arith.constant 0 : index
    %c0_4 = arith.constant 0 : index
    %4 = vector.load %arg3[%c0_3, %c0_4] : memref<1x128xf32, #tpu.memory_space<vmem>>, vector<1x128xf32>
    %5 = vector.broadcast %4 : vector<1x128xf32> to vector<8x128xf32>
    %6 = arith.addf %3, %5 : vector<8x128xf32>
    %cst_5 = arith.constant 0.000000e+00 : f32
    %7 = vector.broadcast %cst_5 : f32 to vector<8x128xf32>
    %8 = arith.maximumf %6, %7 : vector<8x128xf32>
    %9 = arith.truncf %8 : vector<8x128xf32> to vector<8x128xbf16>
    %c0_6 = arith.constant 0 : index
    %c0_7 = arith.constant 0 : index
    %10 = vector.load %arg4[%c0_6, %c0_7] : memref<128x128xbf16, #tpu.memory_space<vmem>>, vector<128x128xbf16>
    %cst_8 = arith.constant dense<0.000000e+00> : vector<8x128xf32>
    %11 = tpu.matmul %9, %10, %cst_8 {dimension_numbers = #tpu.dot_dimension_numbers<[1], [0], [0], [1], [0, 0, 1, 1], [], []>} : vector<8x128xbf16>, vector<128x128xbf16>, vector<8x128xf32> -> vector<8x128xf32>
    %c0_9 = arith.constant 0 : index
    %c0_10 = arith.constant 0 : index
    %12 = vector.load %arg5[%c0_9, %c0_10] : memref<1x128xf32, #tpu.memory_space<vmem>>, vector<1x128xf32>
    %13 = vector.broadcast %12 : vector<1x128xf32> to vector<8x128xf32>
    %14 = arith.addf %11, %13 : vector<8x128xf32>
    %c0_11 = arith.constant 0 : index
    %c0_12 = arith.constant 0 : index
    %15 = vector.load %arg6[%c0_11, %c0_12] : memref<8x128xf32, #tpu.memory_space<vmem>>, vector<8x128xf32>
    tpu.vector_store %arg6[%c0_11, %c0_12], %14 {strides = array<i32>} : memref<8x128xf32, #tpu.memory_space<vmem>>, vector<8x128xf32>,
    return
  }
  func.func @transform_0(%arg0: i32) -> (i32, i32) {
    %c0_i32 = arith.constant 0 : i32
    %c0_i32_0 = arith.constant 0 : i32
    return %arg0, %c0_i32 : i32, i32
  }
  func.func @transform_1(%arg0: i32) -> (i32, i32) {
    %c0_i32 = arith.constant 0 : i32
    %c0_i32_0 = arith.constant 0 : i32
    %c0_i32_1 = arith.constant 0 : i32
    return %c0_i32, %c0_i32_0 : i32, i32
  }
  func.func @transform_2(%arg0: i32) -> (i32, i32) {
    %c0_i32 = arith.constant 0 : i32
    %c0_i32_0 = arith.constant 0 : i32
    %c0_i32_1 = arith.constant 0 : i32
    return %c0_i32, %c0_i32_0 : i32, i32
  }
  func.func @transform_3(%arg0: i32) -> (i32, i32) {
    %c0_i32 = arith.constant 0 : i32
    %c0_i32_0 = arith.constant 0 : i32
    %c0_i32_1 = arith.constant 0 : i32
    return %c0_i32, %c0_i32_0 : i32, i32
  }
  func.func @transform_4(%arg0: i32) -> (i32, i32) {
    %c0_i32 = arith.constant 0 : i32
    %c0_i32_0 = arith.constant 0 : i32
    %c0_i32_1 = arith.constant 0 : i32
    return %c0_i32, %c0_i32_0 : i32, i32
  }
  func.func @transform_5(%arg0: i32) -> (i32, i32) {
    %c0_i32 = arith.constant 0 : i32
    %c0_i32_0 = arith.constant 0 : i32
    return %arg0, %c0_i32 : i32, i32
  }
}

</mosaic_0001>

<bundles_post_ra>
// kernel: coarse_pose_net_pallas.1
= control target key start
LH: loop header
LB: loop body
LE: loop exit
PB: predicated region body
PF: predicated region fallthrough
CT: control target
= control target key end

     0   :  { %10 = vsyncpa [#allocation3], 0  ;;  %s741_s0 = inlined_call_operand.hbm [shape: f32[8,320], index: 0, kind: input, shape index: {}]   ;;  %s742_s1 = inlined_call_operand.hbm [shape: bf16[320,128], index: 1, kind: input, shape index: {}]   ;;  %s743_s2 = inlined_call_operand.vmem [shape: f32[1,128], index: 2, kind: input, shape index: {}]   ;;  %s744_s3 = inlined_call_operand.hbm [shape: bf16[128,128], index: 3, kind: input, shape index: {}]   ;;  %s745_s4 = inlined_call_operand.vmem [shape: f32[1,128], index: 4, kind: input, shape index: {}]   ;;  %s746_s5 = inlined_call_operand.hbm [shape: f32[8,128], index: 5, kind: output, shape index: {}]  }
   0x1   :  { %11 = vsyncpa [#allocation6], 0 }
   0x2   :  { %12 = vsyncpa [#allocation4], 0  ;;  %s669_s18 = smov [#allocation5]  }
   0x3   :  { %s28_s19 = sshll.u32 %s669_s18, 4  ;;  %s29_s19 = int_to_ptr.vmem [resolvable:$true] %s28_s19 }
   0x4   :  { %s591_s20 = scalar_lea.vmem %s29_s19, 2560  ;;  %p596_p1 = scmp.lt.s32.totalorder %s29_s19, %s29_s19 }
   0x5   :  { %p592_p0 = scmp.ne.s32.totalorder %s29_s19, %s591_s20  ;;  %p597_p2 = scmp.lt.s32.totalorder %s591_s20, %s591_s20 }
   0x7   :  { %p598_p3 = por %p597_p2, %p596_p1 }
   0x9   :  { %p599_p4 = pnand %p598_p3, %p592_p0 }
   0xb   :  { %602 = shalt.err (!%p599_p4)
}
   0xc   :  { %s670_s21 = smov 64   ;;  %s671_s22 = smov 4  }
   0xd   :  { %34 = dma.hbm_to_vmem [thread:$0]  %s742_s1, 2560, %s29_s19, [#allocation6], %s670_s21, %s670_s21, %s671_s22  }
   0xe   :  { %s672_s25 = smov [#allocation2]   ;;  %s673_s27 = smov [#allocation7]  }
   0xf   :  { %s19_s26 = sshll.u32 %s672_s25, 4  ;;  %s42_s28 = sshll.u32 %s673_s27, 4  ;;  %s20_s26 = int_to_ptr.vmem [resolvable:$true] %s19_s26  ;;  %s43_s28 = int_to_ptr.vmem [resolvable:$true] %s42_s28 }
  0x10   :  { %s611_s29 = scalar_lea.vmem %s20_s26, 384  ;;  %p616_p6 = scmp.lt.s32.totalorder %s20_s26, %s20_s26 }
  0x11   :  { %p612_p5 = scmp.ne.s32.totalorder %s20_s26, %s611_s29  ;;  %p617_p7 = scmp.lt.s32.totalorder %s611_s29, %s611_s29 }
  0x13   :  { %p618_p8 = por %p617_p7, %p616_p6 }
  0x15   :  { %p619_p9 = pnand %p618_p8, %p612_p5 }
  0x17   :  { %622 = shalt.err (!%p619_p9)
}
  0x18   :  { %22 = dma.hbm_to_vmem [thread:$0]  %s741_s0, 384, %s20_s26, [#allocation3]  }
  0x19   :  { %s631_s7 = scalar_lea.vmem %s43_s28, 1024  ;;  %p636_p11 = scmp.lt.s32.totalorder %s43_s28, %s43_s28 }
  0x1a   :  { %p632_p10 = scmp.ne.s32.totalorder %s43_s28, %s631_s7  ;;  %p637_p12 = scmp.lt.s32.totalorder %s631_s7, %s631_s7 }
  0x1c   :  { %p638_p13 = por %p637_p12, %p636_p11 }
  0x1e   :  { %p639_p0 = pnand %p638_p13, %p632_p10 }
  0x20   :  { %642 = shalt.err (!%p639_p0)
}
  0x21   :  { %48 = dma.hbm_to_vmem [thread:$0]  %s744_s3, 1024, %s43_s28, [#allocation6], %s670_s21, %s670_s21, %s671_s22  }
  0x22   :  { %663 = dma.done.wait [#allocation3], 384  }
  0x23   :  { %664 = vsyncadd [#allocation3], 4294966912 }
  0x24   :  { %665 = dma.done.wait [#allocation6], 3584  }
  0x25   :  { %666 = vsyncadd [#allocation6], 4294963712  ;;  %v674_v0 = vmov 0.0   ;;  %vm675_vm0 = vmmov 0   ;;  %v555_v1 = vld [vmem:[#allocation5 + $0x78] sm:$0xff]   ;;  %v557_v3 = vld [vmem:[#allocation5 + $0x70] sm:$0xff]  }
  0x26   :  { %515 = vmatprep.subr.bf16.mxu1 %v674_v0  ;;  %523 = vmatprep.mubr.msk.bf16.mxu1 %vm675_vm0, %v674_v0  ;;  %v556_v2 = vld [vmem:[#allocation5 + $0x38] sm:$0xff]   ;;  %v558_v4 = vld [vmem:[#allocation5 + $0x30] sm:$0xff]   ;;  %v559_v5 = vld [vmem:[#allocation5 + $0x68] sm:$0xff]   ;;  %vm234_vm1 = vcmask 523264   ;;  %s676_s11 = smov [#allocation8]  }
  0x27   :  { %479 = vmatprep.subr.bf16.mxu0 %v555_v1  ;;  %v560_v6 = vld [vmem:[#allocation5 + $0x28] sm:$0xff]   ;;  %v561_v7 = vld [vmem:[#allocation5 + $0x60] sm:$0xff]   ;;  %v565_v8 = vld [vmem:[#allocation5 + $0x98] sm:$0xff]   ;;  %s438_s12 = sshll.u32 %s676_s11, 4  ;;  %s439_s12 = int_to_ptr.vmem [resolvable:$true] %s438_s12 }
  0x28   :  { %480 = vmatpush3.bf16.msra.mxu0 %v556_v2  ;;  %v562_v9 = vld [vmem:[#allocation5 + $0x20] sm:$0xff]   ;;  %v563_v10 = vld [vmem:[#allocation5 + $0x58] sm:$0xff]   ;;  %516 = vmatpush3.bf16.msra.mxu1 %v565_v8  ;;  %v568_v11 = vld [vmem:[#allocation5 + $0x90] sm:$0xff]   ;;  %p648_p2 = scmp.lt.s32.totalorder %s439_s12, %s439_s12 }
  0x29   :  { %481 = vmatprep.subr.bf16.mxu0 %v557_v3  ;;  %517 = vmatprep.subr.bf16.mxu1 %v674_v0  ;;  %v564_v12 = vld [vmem:[#allocation5 + $0x18] sm:$0xff]   ;;  %v566_v13 = vld [vmem:[#allocation5 + $0x50] sm:$0xff]   ;;  %v571_v14 = vld [vmem:[#allocation5 + $0x88] sm:$0xff]  }
  0x2a   :  { %v567_v15 = vld [vmem:[#allocation5 + $0x10] sm:$0xff]   ;;  %v569_v16 = vld [vmem:[#allocation5 + $0x48] sm:$0xff]   ;;  %v574_v17 = vld [vmem:[#allocation5 + $0x80] sm:$0xff]  }
  0x2b   :  { %v62_v18 = vld [vmem:[#allocation2 + $0x8] sm:$0xff]  ;;  %v63_v19 = vld [vmem:[#allocation2 + $0x10] sm:$0xff]  ;;  %v570_v21 = vld [vmem:[#allocation5 + $0x8] sm:$0xff]  }
  0x2c   :  { %482 = vmatpush3.bf16.msra.mxu0 %v558_v4  ;;  %518 = vmatpush3.bf16.msra.mxu1 %v568_v11  ;;  %v65_v20 = vpack.c.bf16 %v62_v18, %v62_v18  ;;  %v572_v22 = vld [vmem:[#allocation5 + $0x40] sm:$0xff]   ;;  %v66_v23 = vpack.c.bf16 %v63_v19, %v63_v19  ;;  %v575_v24 = vld [vmem:[#allocation7 + $0x38] sm:$0xff]   ;;  %v61_v26 = vld [vmem:[#allocation2] sm:$0xff] }
  0x2d   :  { %483 = vmatprep.subr.bf16.mxu0 %v559_v5  ;;  %519 = vmatprep.subr.bf16.mxu1 %v674_v0  ;;  %v573_v25 = vld [vmem:[#allocation5] sm:$0xff]   ;;  %v576_v27 = vld [vmem:[#allocation7 + $0x30] sm:$0xff]   ;;  %v64_v28 = vpack.c.bf16 %v61_v26, %v61_v26  ;;  %v577_v29 = vld [vmem:[#allocation7 + $0x28] sm:$0xff]  }
  0x2e   :  { %270 = vmatprep.mubr.bf16.mxu0 %v65_v20  ;;  %v578_v30 = vld [vmem:[#allocation7 + $0x20] sm:$0xff]   ;;  %v579_v31 = vld [vmem:[#allocation7 + $0x18] sm:$0xff]   ;;  %v580_v32 = vld [vmem:[#allocation7 + $0x10] sm:$0xff]  }
  0x2f   :  { %v581_v33 = vld [vmem:[#allocation7 + $0x8] sm:$0xff]   ;;  %v582_v34 = vld [vmem:[#allocation7] sm:$0xff]  }
  0x30   :  { %484 = vmatpush3.bf16.msra.mxu0 %v560_v6  ;;  %520 = vmatpush3.bf16.msra.mxu1 %v571_v14  ;;  %v448_v40 = vld [vmem:[%s743_s2] ss:$0 sm:$0xff]  ;;  %s643_s2 = scalar_lea.vmem %s439_s12, 128 }
  0x31   :  { %485 = vmatprep.subr.bf16.mxu0 %v561_v7  ;;  %521 = vmatprep.subr.bf16.mxu1 %v674_v0  ;;  %v470_v49 = vld [vmem:[%s745_s4] ss:$0 sm:$0xff]  ;;  %p644_p1 = scmp.ne.s32.totalorder %s439_s12, %s643_s2  ;;  %p649_p3 = scmp.lt.s32.totalorder %s643_s2, %s643_s2 }
  0x33   :  { %p650_p4 = por %p649_p3, %p648_p2 }
  0x34   :  { %486 = vmatpush3.bf16.msra.mxu0 %v562_v9  ;;  %522 = vmatpush3.bf16.msra.mxu1 %v574_v17 }
  0x35   :  { %487 = vmatprep.subr.bf16.mxu0 %v563_v10  ;;  %527 = vmatprep.subr.bf16.mxu1 %v674_v0  ;;  %p651_p5 = pnand %p650_p4, %p644_p1 }
  0x37   :  { %524 = vmatmul.mubr.msk.bf16.vlgmr.msra.gmra.mxu1 %vm234_vm1, %v66_v23 }
  0x38   :  { %488 = vmatpush3.bf16.msra.mxu0 %v564_v12  ;;  %528 = vmatpush3.bf16.msra.mxu1 %v575_v24 }
  0x39   :  { %489 = vmatprep.subr.bf16.mxu0 %v566_v13  ;;  %529 = vmatprep.subr.bf16.mxu1 %v674_v0 }
  0x3a   :  { %543 = vmatprep.mubr.msk.bf16.mxu1 %vm675_vm0, %v674_v0 }
  0x3c   :  { %490 = vmatpush3.bf16.msra.mxu0 %v567_v15  ;;  %530 = vmatpush3.bf16.msra.mxu1 %v576_v27 }
  0x3d   :  { %491 = vmatprep.subr.bf16.mxu0 %v569_v16  ;;  %531 = vmatprep.subr.bf16.mxu1 %v674_v0 }
  0x40   :  { %492 = vmatpush3.bf16.msra.mxu0 %v570_v21  ;;  %532 = vmatpush3.bf16.msra.mxu1 %v577_v29 }
  0x41   :  { %493 = vmatprep.subr.bf16.mxu0 %v572_v22  ;;  %533 = vmatprep.subr.bf16.mxu1 %v674_v0 }
  0x44   :  { %494 = vmatpush3.bf16.msra.mxu0 %v573_v25  ;;  %534 = vmatpush3.bf16.msra.mxu1 %v578_v30 }
  0x45   :  { %535 = vmatprep.subr.bf16.mxu1 %v674_v0 }
  0x47   :  { %271 = vmatmul.mubr.bf16.vlgmr.msra.gmra.mxu0 %v64_v28 }
  0x48   :  { %536 = vmatpush3.bf16.msra.mxu1 %v579_v31 }
  0x49   :  { %537 = vmatprep.subr.bf16.mxu1 %v674_v0 }
  0x4c   :  { %538 = vmatpush3.bf16.msra.mxu1 %v580_v32 }
  0x4d   :  { %539 = vmatprep.subr.bf16.mxu1 %v674_v0 }
  0x50   :  { %540 = vmatpush3.bf16.msra.mxu1 %v581_v33 }
  0x51   :  { %541 = vmatprep.subr.bf16.mxu1 %v674_v0 }
  0x54   :  { %542 = vmatpush3.bf16.msra.mxu1 %v582_v34 }
  0xf7   :  { %v312_v35 = vpop.f32.mrf.mxu1 }
  0xf9   :  { %v525_v36 = vpop.f32.mrf.mxu1 }
  0xfb   :  { %v315_v37 = vpop.f32.mrf.mxu1 }
  0xfd   :  { %v526_v38 = vpop.f32.mrf.mxu1 }
 0x107   :  { %v495_v39 = vpop.f32.mrf.mxu0 }
 0x109   :  { %v496_v41 = vpop.f32.mrf.mxu0 }
 0x10a   :  { %v497_v42 = vadd.f32 %v496_v41, %v495_v39 }
 0x10b   :  { %v498_v43 = vpop.f32.mrf.mxu0 }
 0x10c   :  { %v273_v44 = vadd.f32 %v497_v42, %v448_v40 }
 0x10d   :  { %v499_v45 = vpop.f32.mrf.mxu0 }
 0x10e   :  { %v313_v46 = vadd.f32 %v312_v35, %v273_v44 }
 0x110   :  { %v318_v47 = vmax.f32 %v313_v46, 0.0 }
 0x112   :  { %v319_v48 = vpack.c.bf16 %v318_v47, %v318_v47 }
 0x114   :  { %544 = vmatmul.mubr.bf16.vlgmr.msra.gmra.mxu1 %v319_v48 }
 0x1d4   :  { %v425_v50 = vpop.f32.mrf.mxu1 }
 0x1d5   :  { %v426_v51 = vadd.f32 %v470_v49, %v425_v50 }
 0x1d6   :  { %v545_v52 = vpop.f32.mrf.mxu1 }
 0x1d7   :  { %431 = vst [vmem:[#allocation8] sm:$0xff] %v426_v51 }
 0x1d8   :  { %v428_v53 = vpop.f32.mrf.mxu1 }
 0x1d9   :  { %654 = shalt.err (!%p651_p5)
}
 0x1da   :  { %441 = dma.vmem_to_hbm [thread:$0]  %s439_s12, 128, %s746_s5, [#allocation4]   ;;  %v546_v54 = vpop.f32.mrf.mxu1 }
 0x1db   :  { %667 = dma.done.wait [#allocation4], 128  }
 0x1dc   :  { %668 = vsyncadd [#allocation4], 4294967168 }
 0x1dd   :  { %445 = vsyncpa [#allocation3], 1 }
 0x1de   :  { %446 = vsyncpa [#allocation6], 1 }
 0x1df   :  { %447 = vsyncpa [#allocation4], 1 }

</bundles_post_ra>
